<compile_context>
chip_gen: v7x
topology: tpu7x:2x2x1
jax: 0.10.0
libtpu: 0.0.40
codegen_flags: <defaults>
</compile_context>

<pallas_src>
import functools

import jax
import jax.numpy as jnp
from jax.experimental import pallas as pl
from jax.experimental.pallas import tpu as pltpu

KH = KW = 3


# ----------------------------- glue: K-major im2col ---------------------------
def _im2col_kmajor(x_nchw, dtype=jnp.bfloat16):
    """NCHW -> (B, 9*C, H*W) bf16: taps folded into the contracting dim, HW in lanes."""
    x = x_nchw.astype(dtype)
    B, C, H, W = x.shape
    xp = jnp.pad(x, ((0, 0), (0, 0), (1, 1), (1, 1)))
    taps = []
    for kh in range(KH):
        for kw in range(KW):
            taps.append(xp[:, :, kh:kh + H, kw:kw + W].reshape(B, C, H * W))
    # K ordering = (tap, channel); synthetic weights below use the same flat order.
    return jnp.concatenate(taps, axis=1)                         # (B, 9*C, HW)


def _pick_hw_tile(hw, max_tile=2048):
    """Largest HW tile that is a multiple of 128 (or the full HW) dividing HW."""
    if hw <= max_tile:
        return hw
    t = (max_tile // 128) * 128
    while t >= 128:
        if hw % t == 0:
            return t
        t -= 128
    return hw


# ------------------------------- Pallas kernels -------------------------------
def _depth_kernel(x_ref, w_ref, b_ref, o_ref):
    # x_ref: (1, K, T) bf16   w_ref: (1, K) bf16   b_ref: (1, 1) f32   o_ref: (1, 1, T) f32
    acc = jnp.dot(w_ref[...], x_ref[0], preferred_element_type=jnp.float32)   # (1, T)
    o_ref[0] = jax.nn.sigmoid(acc + b_ref[...])                  # inverse depth in (0, 1)


def _pose_kernel(x_ref, w_ref, b_ref, wfc_ref, bfc_ref, o_ref, acc_ref, *, inv_hw):
    # x_ref: (1, K, T) bf16   w_ref: (hid, K) bf16   b_ref: (hid, 1) f32
    # wfc_ref: (out, hid) f32 bfc_ref: (out, 1) f32  o_ref: (1, out, 1) f32
    # acc_ref: VMEM scratch (hid, 1) f32 — running GAP sum across HW tiles.
    ti = pl.program_id(1)

    @pl.when(ti == 0)
    def _():
        acc_ref[...] = jnp.zeros_like(acc_ref)

    act = jnp.dot(w_ref[...], x_ref[0], preferred_element_type=jnp.float32)   # (hid, T)
    act = jnp.maximum(act + b_ref[...], 0.0)                     # ReLU, lane-dense
    acc_ref[...] += jnp.sum(act, axis=1, keepdims=True)          # partial GAP sum (hid, 1)

    @pl.when(ti == pl.num_programs(1) - 1)
    def _():
        pooled = acc_ref[...] * inv_hw                           # (hid, 1) global avg pool
        out = jnp.dot(wfc_ref[...], pooled,
                      preferred_element_type=jnp.float32) + bfc_ref[...]      # (out, 1)
        o_ref[0] = 0.01 * out                                    # packnet-style pose scaling


# ------------------------------- net wrappers ---------------------------------
def depth_net_pallas(rgb_nchw, w, b, hw_tile=None):
    B, C, H, W = rgb_nchw.shape
    HW = H * W
    T = _pick_hw_tile(HW) if hw_tile is None else hw_tile
    assert HW % T == 0 and (T == HW or T % 128 == 0)
    K = KH * KW * C

    x_k = _im2col_kmajor(rgb_nchw)                               # (B, K, HW) bf16
    w_b = w.reshape(1, K).astype(jnp.bfloat16)                   # (1, K)
    b_f = b.reshape(1, 1).astype(jnp.float32)

    out = pl.pallas_call(
        _depth_kernel,
        out_shape=jax.ShapeDtypeStruct((B, 1, HW), jnp.float32),
        grid=(B, HW // T),
        in_specs=[
            pl.BlockSpec((1, K, T), lambda bi, ti: (bi, 0, ti)),
            pl.BlockSpec((1, K), lambda bi, ti: (0, 0)),
            pl.BlockSpec((1, 1), lambda bi, ti: (0, 0)),
        ],
        out_specs=pl.BlockSpec((1, 1, T), lambda bi, ti: (bi, 0, ti)),
        compiler_params=pltpu.CompilerParams(
            dimension_semantics=("parallel", "parallel"),
            vmem_limit_bytes=32 * 1024 * 1024),
    )(x_k, w_b, b_f)
    return out.reshape(B, 1, H, W)                               # NCHW depth map [B,1,H,W]


def pose_net_pallas(rgb_nchw, contexts, w, b, wfc, bfc, num_context, hw_tile=None):
    # pose net consumes target + context images concatenated along channel (NCHW).
    x = jnp.concatenate([rgb_nchw] + list(contexts), axis=1)     # [B, 3*(1+nc), H, W]
    B, C, H, W = x.shape
    HW = H * W
    T = _pick_hw_tile(HW) if hw_tile is None else hw_tile
    assert HW % T == 0 and (T == HW or T % 128 == 0)
    K = KH * KW * C
    hid = w.shape[0]
    out_dim = wfc.shape[0]

    x_k = _im2col_kmajor(x)                                      # (B, K, HW) bf16
    w_b = w.astype(jnp.bfloat16)                                 # (hid, K)
    b_f = b.reshape(hid, 1).astype(jnp.float32)
    wfc_f = wfc.astype(jnp.float32)                              # (out_dim, hid)
    bfc_f = bfc.reshape(out_dim, 1).astype(jnp.float32)

    kernel = functools.partial(_pose_kernel, inv_hw=float(1.0 / HW))
    out = pl.pallas_call(
        kernel,
        out_shape=jax.ShapeDtypeStruct((B, out_dim, 1), jnp.float32),
        grid=(B, HW // T),
        in_specs=[
            pl.BlockSpec((1, K, T), lambda bi, ti: (bi, 0, ti)),
            pl.BlockSpec((hid, K), lambda bi, ti: (0, 0)),
            pl.BlockSpec((hid, 1), lambda bi, ti: (0, 0)),
            pl.BlockSpec((out_dim, hid), lambda bi, ti: (0, 0)),
            pl.BlockSpec((out_dim, 1), lambda bi, ti: (0, 0)),
        ],
        out_specs=pl.BlockSpec((1, out_dim, 1), lambda bi, ti: (bi, 0, 0)),
        scratch_shapes=[pltpu.VMEM((hid, 1), jnp.float32)],
        compiler_params=pltpu.CompilerParams(
            dimension_semantics=("parallel", "arbitrary"),
            vmem_limit_bytes=32 * 1024 * 1024),
    )(x_k, w_b, b_f, wfc_f, bfc_f)
    return out.reshape(B, num_context, 6)                        # pose 6-vectors per context


# --------------------------- Pose.from_vec (euler) -----------------------------
def _euler2mat(angle):
    x, y, z = angle[:, 0], angle[:, 1], angle[:, 2]
    zeros = jnp.zeros_like(x)
    ones = jnp.ones_like(x)
    cz, sz = jnp.cos(z), jnp.sin(z)
    cy, sy = jnp.cos(y), jnp.sin(y)
    cx, sx = jnp.cos(x), jnp.sin(x)
    zmat = jnp.stack([cz, -sz, zeros, sz, cz, zeros, zeros, zeros, ones], 1).reshape(-1, 3, 3)
    ymat = jnp.stack([cy, zeros, sy, zeros, ones, zeros, -sy, zeros, cy], 1).reshape(-1, 3, 3)
    xmat = jnp.stack([ones, zeros, zeros, zeros, cx, -sx, zeros, sx, cx], 1).reshape(-1, 3, 3)
    return xmat @ ymat @ zmat


def pose_from_vec(vec, rotation_mode='euler'):
    """vec: [B, 6] = (tx, ty, tz, rx, ry, rz) -> 4x4 transform [B, 4, 4]."""
    assert rotation_mode == 'euler'
    trans = vec[:, :3, None]                                     # [B, 3, 1]
    rot = _euler2mat(vec[:, 3:])                                 # [B, 3, 3]
    mat34 = jnp.concatenate([rot, trans], axis=2)                # [B, 3, 4]
    bottom = jnp.broadcast_to(jnp.array([0., 0., 0., 1.], jnp.float32),
                              (vec.shape[0], 1, 4))
    return jnp.concatenate([mat34, bottom], axis=1)              # [B, 4, 4]


# ---------------------------------- SfmModel -----------------------------------
class SfmModel:
    def __init__(self, depth_params, pose_params, rotation_mode='euler',
                 flip_lr_prob=0.0, num_context=2, hw_tile=None):
        self.depth_params = depth_params
        self.pose_params = pose_params
        self.rotation_mode = rotation_mode
        self.flip_lr_prob = flip_lr_prob
        self.num_context = num_context
        self.hw_tile = hw_tile
        self.training = False
        self._logs = {}
        self._losses = {}

    def compute_inv_depths(self, image, file):
        # flip_model: random flip only at training time; eval forward -> flip_lr=False.
        flip_lr = False
        x = jnp.flip(image, axis=-1) if flip_lr else image
        d = depth_net_pallas(x, *self.depth_params, hw_tile=self.hw_tile)   # [B, 1, H, W]
        d = jnp.flip(d, axis=-1) if flip_lr else d
        return [d[:, None]]                                      # unsqueeze(1) -> [B,1,1,H,W]

    def compute_poses(self, image, contexts):
        pose_vec = pose_net_pallas(image, contexts, *self.pose_params,
                                   self.num_context, hw_tile=self.hw_tile)
        return [pose_from_vec(pose_vec[:, i], self.rotation_mode)
                for i in range(pose_vec.shape[1])]

    def forward(self, batch, return_logs=False):
        # NOTE: the reference does batch['idx'].tolist() (a host-blocking transfer)
        # but the value is never used for compute; pass the device array through so
        # both pallas_calls can dispatch asynchronously.
        inv_depths = self.compute_inv_depths(batch['rgb'], batch.get('idx'))
        pose = None
        if 'rgb_context' in batch and self.pose_params is not None:
            pose = self.compute_poses(batch['rgb'], batch['rgb_context'])
        return {'inv_depths': inv_depths, 'poses': pose}


# ------------------------------------ main --------------------------------------
if __name__ == "__main__":
    key = jax.random.PRNGKey(0)
    B, C, H, W = 2, 3, 16, 16
    num_context = 2
    hidden = 8
    keys = jax.random.split(key, 8)

    # depth net params: 3x3 conv, 3 -> 1 (+ sigmoid); weight flat over (tap, channel)
    w_d = 0.1 * jax.random.normal(keys[0], (1, KH * KW * C), jnp.float32)
    b_d = 0.1 * jax.random.normal(keys[1], (1, 1), jnp.float32)

    # pose net params: 3x3 conv, 3*(1+nc) -> hidden ; FC hidden -> 6*nc
    cin_pose = C * (1 + num_context)
    w_p = 0.1 * jax.random.normal(keys[2], (hidden, KH * KW * cin_pose), jnp.float32)
    b_p = 0.1 * jax.random.normal(keys[3], (hidden, 1), jnp.float32)
    wfc = 0.1 * jax.random.normal(keys[4], (6 * num_context, hidden), jnp.float32)
    bfc = 0.1 * jax.random.normal(keys[5], (6 * num_context, 1), jnp.float32)

    rgb = jax.random.normal(keys[6], (B, C, H, W), jnp.float32)
    rgb_context = [
        jax.random.normal(jax.random.fold_in(keys[7], i), (B, C, H, W), jnp.float32)
        for i in range(num_context)
    ]
    batch = {
        'idx': jnp.arange(B, dtype=jnp.int32),
        'rgb': rgb,
        'rgb_context': rgb_context,
    }

    # hw_tile=128 exercises the tiled-HW path (HW=256 -> 2 tiles per image) and the
    # cross-tile GAP accumulator in the pose kernel.
    model = SfmModel(depth_params=(w_d, b_d),
                     pose_params=(w_p, b_p, wfc, bfc),
                     rotation_mode='euler',
                     flip_lr_prob=0.0,
                     num_context=num_context,
                     hw_tile=128)

    out = model.forward(batch)

    inv_depth = jax.block_until_ready(out['inv_depths'][0])      # [B, 1, 1, H, W]
    for p in out['poses']:
        jax.block_until_ready(p)                                 # [B, 4, 4] each

    assert inv_depth.shape == (B, 1, 1, H, W)
    assert bool(jnp.all(jnp.isfinite(inv_depth)))
    assert len(out['poses']) == num_context
    assert all(p.shape == (B, 4, 4) for p in out['poses'])
    print("KERNEL_OK")
</pallas_src>

<mosaic_0001>
module attributes {stable_mosaic.version = 11 : i64} {
  func.func @_depth_kernel(%arg0: i32, %arg1: i32, %arg2: memref<1x27x128xbf16, #tpu.memory_space<vmem>>, %arg3: memref<1x27xbf16, #tpu.memory_space<vmem>>, %arg4: memref<1x1xf32, #tpu.memory_space<vmem>>, %arg5: memref<1x1x128xf32, #tpu.memory_space<vmem>>) attributes {dimension_semantics = [#tpu.dimension_semantics<parallel>, #tpu.dimension_semantics<parallel>], iteration_bounds = array<i64: 2, 2>, scalar_prefetch = 0 : i64, scratch_operands = 0 : i64, tpu.core_type = #tpu.core_type<tc>, window_params = [{transform_indices = @transform_0, window_bounds = array<i64: 1, 27, 128>}, {pipeline_mode = #tpu.pipeline_mode<synchronous>, transform_indices = @transform_1, window_bounds = array<i64: 1, 27>}, {pipeline_mode = #tpu.pipeline_mode<synchronous>, transform_indices = @transform_2, window_bounds = array<i64: 1, 1>}, {transform_indices = @transform_3, window_bounds = array<i64: 1, 1, 128>}]} {
    %c0 = arith.constant 0 : index
    %c0_0 = arith.constant 0 : index
    %0 = vector.load %arg3[%c0, %c0_0] : memref<1x27xbf16, #tpu.memory_space<vmem>>, vector<1x27xbf16>
    %c0_1 = arith.constant 0 : index
    %c0_2 = arith.constant 0 : index
    %c0_3 = arith.constant 0 : index
    %1 = vector.load %arg2[%c0_1, %c0_2, %c0_3] : memref<1x27x128xbf16, #tpu.memory_space<vmem>>, vector<1x27x128xbf16>
    %2 = vector.shape_cast %1 : vector<1x27x128xbf16> to vector<27x128xbf16>
    %cst = arith.constant dense<0.000000e+00> : vector<1x128xf32>
    %3 = tpu.matmul %0, %2, %cst {dimension_numbers = #tpu.dot_dimension_numbers<[1], [0], [0], [1], [0, 0, 1, 1], [], []>} : vector<1x27xbf16>, vector<27x128xbf16>, vector<1x128xf32> -> vector<1x128xf32>
    %c0_4 = arith.constant 0 : index
    %c0_5 = arith.constant 0 : index
    %4 = vector.load %arg4[%c0_4, %c0_5] : memref<1x1xf32, #tpu.memory_space<vmem>>, vector<1x1xf32>
    %5 = vector.broadcast %4 : vector<1x1xf32> to vector<1x128xf32>
    %6 = arith.addf %3, %5 : vector<1x128xf32>
    %7 = arith.negf %6 : vector<1x128xf32>
    %8 = math.exp %7 : vector<1x128xf32>
    %cst_6 = arith.constant 1.000000e+00 : f32
    %9 = vector.broadcast %cst_6 : f32 to vector<1x128xf32>
    %10 = arith.addf %9, %8 : vector<1x128xf32>
    %11 = arith.divf %9, %10 : vector<1x128xf32>
    %c0_7 = arith.constant 0 : index
    %c0_8 = arith.constant 0 : index
    %c0_9 = arith.constant 0 : index
    %12 = vector.load %arg5[%c0_7, %c0_8, %c0_9] : memref<1x1x128xf32, #tpu.memory_space<vmem>>, vector<1x1x128xf32>
    %13 = vector.shape_cast %12 : vector<1x1x128xf32> to vector<1x128xf32>
    %14 = vector.shape_cast %11 : vector<1x128xf32> to vector<1x1x128xf32>
    tpu.vector_store %arg5[%c0_7, %c0_8, %c0_9], %14 {strides = array<i32>} : memref<1x1x128xf32, #tpu.memory_space<vmem>>, vector<1x1x128xf32>,
    return
  }
  func.func @transform_0(%arg0: i32, %arg1: i32) -> (i32, i32, i32) {
    %c0_i32 = arith.constant 0 : i32
    %c0_i32_0 = arith.constant 0 : i32
    return %arg0, %c0_i32, %arg1 : i32, i32, i32
  }
  func.func @transform_1(%arg0: i32, %arg1: i32) -> (i32, i32) {
    %c0_i32 = arith.constant 0 : i32
    %c0_i32_0 = arith.constant 0 : i32
    %c0_i32_1 = arith.constant 0 : i32
    return %c0_i32, %c0_i32_0 : i32, i32
  }
  func.func @transform_2(%arg0: i32, %arg1: i32) -> (i32, i32) {
    %c0_i32 = arith.constant 0 : i32
    %c0_i32_0 = arith.constant 0 : i32
    %c0_i32_1 = arith.constant 0 : i32
    return %c0_i32, %c0_i32_0 : i32, i32
  }
  func.func @transform_3(%arg0: i32, %arg1: i32) -> (i32, i32, i32) {
    %c0_i32 = arith.constant 0 : i32
    %c0_i32_0 = arith.constant 0 : i32
    return %arg0, %c0_i32, %arg1 : i32, i32, i32
  }
}

</mosaic_0001>

<bundles_post_ra>
// kernel: tpu_custom_call.1
= control target key start
LH: loop header
LB: loop body
LE: loop exit
PB: predicated region body
PF: predicated region fallthrough
CT: control target
= control target key end

     0   :  { %s803_s0 = inlined_call_operand.vmem [shape: bf16[2,27,256], index: 0, kind: input, shape index: {}]   ;;  %s804_s1 = inlined_call_operand.vmem [shape: bf16[1,27], index: 1, kind: input, shape index: {}]   ;;  %s805_s2 = inlined_call_operand.<no memory space> [shape: f32[1,1], index: 2, kind: input, shape index: {}]   ;;  %s806_s3 = inlined_call_operand.hbm [shape: f32[2,1,256], index: 3, kind: output, shape index: {}]  }
   0x1   :  { %v8_v0 = vstv %s805_s2 }
   0x2   :  { %9 = vst [vmem:[#allocation2] sm:$0x1] %v8_v0 }
   0x3   :  { %10 = vsyncpa [#allocation5], 0 }
   0x4   :  { %12 = vsyncpa [#allocation5 + $0x1], 0  ;;  %s651_s14 = smov 0   ;;  %s653_s15 = smov 0  }
   0x5   :  { %s655_s16 = smov 0   ;;  %s657_s17 = smov 0  }
   0x6   :  { %s659_s18 = smov 0   ;;  %s661_s19 = smov 0  }
   0x7   :  { %s663_s20 = smov 0   ;;  %s665_s21 = smov 0  }
   0x8 LB: > { %s417_s2 = sadd.s32 4294967295, %s621_s21   ;;  %s418_s22 = sadd.s32 4294967294, %s621_s21   ;;  %s621_s21 = sphi %s665_s21, %s18_s21   ;;  %s617_s20 = sphi %s663_s20, %s816_s20   ;;  %s613_s19 = sphi %s661_s19, %s815_s19   ;;  %s609_s18 = sphi %s659_s18, %s814_s18   ;;  %s605_s17 = sphi %s657_s17, %s813_s17   ;;  %s601_s16 = sphi %s655_s16, %s812_s16   ;;  %s597_s15 = sphi %s653_s15, %s811_s15   ;;  %s593_s14 = sphi %s651_s14, %s810_s14  }
   0x9   : > { %s27_s23 = sadd.s32 1, %s613_s19  ;;  %s30_s24 = sadd.s32 1, %s617_s20 }
   0xa   : > { %p28_p0 = scmp.ge.s32.totalorder %s27_s23, 2  ;;  %p46_p1 = scmp.ne.s32.totalorder %s601_s16, %s597_s15 }
   0xb   : > { %p47_p2 = scmp.eq.s32.totalorder %s621_s21, 0  ;;  %p120_p5 = scmp.eq.s32.totalorder %s417_s2, 3 }
   0xc   : > { %s818_s23 = smov (%p28_p0, %s27_s23), 0  ;;  %s820_s24 = smov (!%p28_p0, %s30_s24), %s617_s20 }
   0xd   : > { %s35_s25 = ssub.s32 %s613_s19, %s818_s23  ;;  %p703_p3 = por %p47_p2, %p46_p1 }
   0xe   : > { %p32_p4 = scmp.ge.s32.totalorder %s820_s24, 2  ;;  %p125_p6 = scmp.ne.s32.totalorder %s597_s15, %s593_s14 }
   0xf   : > { %p126_p7 = scmp.eq.s32.totalorder %s418_s22, 3  ;;  %p711_p8 = por %p120_p5, %p46_p1 }
  0x10   : > { %s822_s24 = smov (%p32_p4, %s820_s24), 0  ;;  %s39_s4 = sadd.s32 1, %s601_s16 }
  0x11   : > { %p715_p9 = por %p126_p7, %p125_p6  ;;  %s34_s29 = ssub.s32 %s617_s20, %s822_s24 }
  0x12   : > { %s36_s30 = sor.u32 %s35_s25, %s34_s29  ;;  %p420_p11 = scmp.ge.s32.totalorder %s621_s21, 4 }
  0x13   : > { %p37_p10 = scmp.eq.s32.totalorder %s36_s30, 0 }
  0x14   : > { %148 = sbr.rel (%p420_p11) target bundleno = 35 (0x23), region = 24 }
  0x15   : > { %s723_s5 = scalar_select %p37_p10, %s601_s16, %s39_s4  }
  0x1b   : > { %151 = sbr.rel (!%p703_p3) target bundleno = 35 (0x23), region = 28  ;;  %s153_s6 = sand.u32 (%p703_p3), 1, %s601_s16  }
  0x1c   : > { %s422_s7 = sshll.u32 (%p703_p3), %s617_s20, 3  ;;  %s421_s8 = sshll.u32 (%p703_p3), %s153_s6, 4 }
  0x1d   : > { %s157_s9 = sadd.s32 (%p703_p3), %s613_s19, %s422_s7  ;;  %s155_s2 = scalar_lea.vmem (%p703_p3), [#allocation3], %s421_s8 }
  0x1e   : > { %s423_s10 = sshll.u32 (%p703_p3), %s157_s9, 2 }
  0x1f   : > { %s159_s13 = scalar_lea.vmem (%p703_p3), %s803_s0, %s423_s10 }
  0x20   : > { %v175_v1 = vld [vmem:[%s159_s13] sm:$0xf] (%p703_p3)  ;;  %v177_v2 = vld [vmem:[%s159_s13 + $0x8] sm:$0xf] (%p703_p3)  ;;  %v179_v3 = vld [vmem:[%s159_s13 + $0x10] sm:$0xf] (%p703_p3) }
  0x21   : > { %176 = vst [vmem:[%s155_s2] sm:$0xf] (%p703_p3), %v175_v1  ;;  %178 = vst [vmem:[%s155_s2 + $0x4] sm:$0xf] (%p703_p3), %v177_v2  ;;  %v181_v4 = vld [vmem:[%s159_s13 + $0x18] sm:$0xf] (%p703_p3) }
  0x22   : > { %180 = vst [vmem:[%s155_s2 + $0x8] sm:$0xf] %v179_v3  ;;  %182 = vst [vmem:[%s155_s2 + $0xc] sm:$0xf] %v181_v4 }
  0x23 PF: > { %p424_p12 = scmp.ge.s32.totalorder %s621_s21, 1  ;;  %p212_p13 = scmp.lt.s32.totalorder %s621_s21, 5 }
  0x25   : > { %p213_p0 = pnand %p424_p12, %p212_p13 }
  0x26   : > { %s737_s22 = sand.u32 (!%p213_p0), 1, %s597_s15   ;;  %vm272_vm0 = vcmask (!%p213_p0), 1044480   ;;  %vm273_vm1 = vcmask (!%p213_p0), 1045504   ;;  %v623_v5 = vmov (!%p213_p0), 0.0   ;;  %v624_v6 = vmov (!%p213_p0), 65535   ;;  %s430_s4 = sshll.u32 (!%p213_p0), %s609_s18, 1 }
  0x27   : > { %216 = sbr.rel (%p213_p0) target bundleno = 303 (0x12f), region = 69  ;;  %437 = vmatprep.subr.bf16.mxu0 (!%p213_p0), %v623_v5  ;;  %s425_s25 = sshll.u32 (!%p213_p0), %s737_s22, 4  ;;  %v274_v7 = vsel (!%p213_p0), %vm272_vm0, 4294967295, %v624_v6  ;;  %vm625_vm2 = vmmov (!%p213_p0), 0   ;;  %v247_v8 = vld [vmem:[#allocation2] sm:$0x1] (!%p213_p0)  ;;  %v253_v15 = vlaneseq (!%p213_p0) }
  0x28   : > { %441 = vmatprep.mubr.msk.bf16.mxu0 (!%p213_p0), %vm625_vm2, %v623_v5  ;;  %s221_s26 = scalar_lea.vmem (!%p213_p0), [#allocation3], %s425_s25  ;;  %v275_v10 = vsel (!%p213_p0), %vm273_vm1, %v274_v7, 0  ;;  %v626_v11 = vmov (!%p213_p0), 0   ;;  %v242_v14 = vld [vmem:[%s804_s1] sm:$0x1] (!%p213_p0)  ;;  %vm268_vm3 = vcmask (!%p213_p0), 220160   ;;  %s337_s6 = sadd.s32 (!%p213_p0), %s605_s17, %s430_s4 }
  0x29   : > { %v521_v9 = vld [vmem:[%s221_s26] sm:$0xff] (!%p213_p0)   ;;  %520 = vset.pattern.permute.xlu0 (!%p213_p0), %v626_v11  ;;  %v522_v12 = vld [vmem:[%s221_s26 + $0x8] sm:$0x3f] (!%p213_p0)   ;;  %v254_v16 = vshrl.u32 (!%p213_p0), %v253_v15, 7  ;;  %s431_s7 = sshll.u32 (!%p213_p0), %s337_s6, 4  ;;  %s240_s8 = scalar_lea.vmem (!%p213_p0), [#allocation4], %s737_s22 }
  0x2a   : > { %250 = vperm.xlu0 (!%p213_p0), %520, %v247_v8   ;;  %438 = vmatpush3.bf16.msra.mxu0 (!%p213_p0), %v521_v9  ;;  %v277_v13 = vand.u32 (!%p213_p0), %v522_v12, %v275_v10  ;;  %s341_s9 = sshll.u32 (!%p213_p0), %s240_s8, 4  ;;  %s749_s12 = scalar_lea.hbm (!%p213_p0), %s806_s3, %s431_s7  ;;  %s751_s9 = int_to_ptr.vmem [resolvable:$true] %s341_s9 }
  0x2b   : > { %439 = vmatprep.subr.bf16.mxu0 (!%p213_p0), %v623_v5  ;;  %v255_v17 = vsub.s32 (!%p213_p0), 0, %v254_v16  ;;  %s327_s13 = scalar_lea.sflag (!%p213_p0), [#allocation5], %s737_s22  ;;  %s527_s2 = scalar_lea.vmem (!%p213_p0), %s751_s9, 16 }
  0x2c   : > { %p528_p1 = scmp.ne.s32.totalorder (!%p213_p0), %s751_s9, %s527_s2  ;;  %s627_s17 = smov (!%p213_p0), [#allocation4]  }
  0x2d   : > { %s531_s18 = sshll.u32 (!%p213_p0), %s627_s17, 4  ;;  %s532_s18 = int_to_ptr.vmem [resolvable:$false] %s531_s18 }
  0x2e   : > { %440 = vmatpush3.bf16.msra.mxu0 %v277_v13  ;;  %p529_p2 = pnand %p528_p1, %p711_p8  ;;  %s533_s25 = scalar_lea.vmem %s532_s18, 32 }
  0x2f   : > { %p534_p4 = scmp.lt.s32.totalorder %s751_s9, %s532_s18  ;;  %p535_p5 = scmp.lt.s32.totalorder %s533_s25, %s527_s2 }
  0x30   : > { %p530_p3 = pneg %p529_p2 }
  0x31   : > { %442 = vmatmul.mubr.msk.bf16.vlgmr.msra.gmra.mrb[0].mxu0 %vm268_vm3, %v242_v14  ;;  %p536_p6 = por %p535_p5, %p534_p4 }
  0x33   : > { %p537_p7 = pnand %p536_p6, %p530_p3 }
  0xa9   : > { %v251_v18 = vpop.permute.xlu0 %250 }
  0xaa   : > { %v256_v19 = vrot.slane %v251_v18, %v255_v17 }
 0x104   : > { %v313_v20 = vpop.f32.mrb[0].mxu0 }
 0x105   : > { %v314_v21 = vadd.f32 %v313_v20, %v256_v19  ;;  %v443_v22 = vpop.f32.mrb[1].mxu0 }
 0x106   : > { %v316_v23 = vpop.f32.mrb[2].mxu0 }
 0x107   : > { %v429_v24 = vmul.f32 -1.442695, %v314_v21  ;;  %v444_v25 = vpop.f32.mrb[3].mxu0 }
 0x109   : > { %523 = vpow2.f32 %v429_v24 }
 0x113   : > { %v524_v26 = vpop.eup %523 }
 0x114   : > { %v322_v27 = vadd.f32 1.0, %v524_v26 }
 0x116   : > { %525 = vrcp.f32 %v322_v27 }
 0x120   : > { %v526_v28 = vpop.eup %525 }
 0x121   : > { %325 = vst [vmem:[%s240_s8] sm:$0x1] %v526_v28 }
 0x122   : > { %540 = shalt.err (!%p537_p7)
}
 0x123   : > { %s541_s22 = scalar_lea.hbm %s749_s12, 16  ;;  %s545_s30 = scalar_lea.hbm %s806_s3, 64 }
 0x124   : > { %p542_p10 = scmp.ne.s32.totalorder %s749_s12, %s541_s22  ;;  %p546_p13 = scmp.lt.u32.totalorder %s749_s12, %s806_s3 }
 0x125   : > { %p547_p0 = scmp.lt.u32.totalorder %s545_s30, %s541_s22  ;;  %p549_p2 = scmp.lt.u32.totalorder %s541_s22, %s749_s12 }
 0x126   : > { %p543_p11 = pnand %p542_p10, %p711_p8 }
 0x127   : > { %p548_p1 = por %p547_p0, %p546_p13 }
 0x128   : > { %p544_p12 = pneg %p543_p11 }
 0x129   : > { %p550_p3 = por %p549_p2, %p548_p1 }
 0x12b   : > { %p551_p4 = pnand %p550_p3, %p544_p12 }
 0x12d   : > { %554 = shalt.err (!%p551_p4)
}
 0x12e   : > { %445 = dma.vmem_to_hbm [thread:$0]  (%p711_p8), %s751_s9, 16, %s749_s12, %s327_s13  }
 0x12f PF: > { %p451_p5 = scmp.ge.s32.totalorder %s621_s21, 2  ;;  %s353_s7 = sand.u32 1, %s593_s14  }
 0x130   : > { %s354_s8 = scalar_lea.sflag [#allocation5], %s353_s7 }
 0x131   : > { %p448_p6 = pnand %p451_p5, %p715_p9 }
 0x133   : > { %588 = dma.done.wait (!%p448_p6), %s354_s8, 16  }
 0x134   : > { %590 = vsyncadd (!%p448_p6), %s354_s8, 4294967280  ;;  %s18_s21 = sadd.s32 1, %s621_s21   ;;  %s810_s14 = smov %s597_s15 }
 0x135   : > { %p15_p7 = scmp.ge.s32.totalorder %s18_s21, 6   ;;  %s811_s15 = smov %s601_s16 }
 0x136   : > { %s812_s16 = smov %s723_s5  ;;  %s813_s17 = smov %s613_s19 }
 0x137   : > { %s814_s18 = smov %s617_s20  ;;  %s815_s19 = smov %s818_s23 }
 0x138   : > { %s816_s20 = smov %s822_s24  ;;  %17 = sbr.rel (!%p15_p7) target bundleno = 8 (0x8), region = 113 }
 0x13f   :  { %358 = vsyncpa [#allocation5], 1 }
 0x140   :  { %360 = vsyncpa [#allocation5 + $0x1], 1 }

</bundles_post_ra>
